<compile_context>
chip_gen: v6e
topology: v6e:2x2x1
jax: 0.10.0
libtpu: 0.0.40
codegen_flags: <defaults>
</compile_context>

<pallas_src>
import functools

import jax
import jax.numpy as jnp
from jax import lax
from jax.experimental import pallas as pl
from jax.experimental.pallas import tpu as pltpu

BN_EPS = 1e-5


def _round_up(x, m):
    return (x + m - 1) // m * m


def _physical_vmem_bytes():
    """Per-core VMEM capacity; conservative (v7x = 64 MiB/TC) fallback."""
    try:
        return int(pltpu.get_tpu_info().vmem_capacity_bytes)
    except Exception:
        return 64 << 20


def _pick_row_tile(N, H, Wp, Lflat, c_pad, c_out, n_taps, cbytes, obytes,
                   in_bufs, budget_bytes):
    """Largest divisor TH of H whose lane extent (TH*Wp) is 128-aligned (or
    TH == H, the full-array escape hatch) and whose TOTAL per-step VMEM footprint
    (resident image + weights + im2col scratch + matmul temp + double-buffered
    output) fits the chip-aware budget."""
    legal = [th for th in range(H, 0, -1)
             if H % th == 0 and ((th * Wp) % 128 == 0 or th == H)]
    if N == 1:
        # v7x has 2 TensorCores per chip: with a single batch element we need at
        # least 2 row tiles or the kernel serializes onto one core.
        multi = [th for th in legal if H // th >= 2]
        if multi:
            legal = multi
    const = (in_bufs * c_pad * Lflat * cbytes        # resident padded image
             + 2 * c_out * n_taps * c_pad * cbytes   # weights (double-buffered)
             + 2 * c_out * 4)                        # BN shift
    for th in legal:                                 # largest first
        L = th * Wp
        fp = const + L * (n_taps * c_pad * cbytes    # im2col scratch
                          + c_out * 4                # f32 matmul result temp
                          + 2 * c_out * obytes)      # output, double-buffered
        if fp <= budget_bytes:
            return th
    return legal[-1]                                 # smallest legal tile


def _conv_bn_relu_kernel(x_ref, w_ref, shift_ref, o_ref, xcol_ref, *,
                         TH, H, Wp, KH, KW, C_pad):
    # x_ref:     (1, C_pad, Lflat)       bf16  padded image, flattened over (Hp, Wp),
    #                                          channel-padded to the sublane multiple,
    #                                          VMEM-resident across the row-tile axis
    # w_ref:     (C_out, KH*KW*C_pad)    bf16  BN-scale-folded im2col weight matrix
    # shift_ref: (C_out, 1)              f32   folded BN shift  (beta - mean*scale)
    # o_ref:     (1, C_out, TH*Wp)       bf16  lane-dense output row tile
    # xcol_ref:  (KH*KW*C_pad, TH*Wp)    bf16  VMEM im2col scratch
    L = TH * Wp
    if TH == H:
        base0 = 0                                    # single tile -> fully static slices
    else:
        base0 = pl.multiple_of(pl.program_id(1) * L, 128)

    # Build the im2col buffer: tap t = (kh, kw) is a contiguous lane-offset window
    # of the flattened padded image (1-D shift, no 2-D sublane-crossing re-slices).
    # Stores are sublane-tile aligned because C_pad is a multiple of the packing.
    for kh in range(KH):
        for kw in range(KW):
            t = kh * KW + kw
            base = base0 + kh * Wp + kw
            xcol_ref[pl.ds(t * C_pad, C_pad), :] = x_ref[0, :, pl.ds(base, L)]

    # One MXU contraction: (C_out, KH*KW*C_pad) @ (KH*KW*C_pad, TH*Wp) -> f32 acc.
    acc = jnp.dot(w_ref[...], xcol_ref[...], preferred_element_type=jnp.float32)

    # BN scale already folded into w_ref; epilogue = shift + ReLU in f32, cast out.
    o_ref[0] = jnp.maximum(acc + shift_ref[...], 0.0).astype(o_ref.dtype)


def conv_layer_forward(x_nchw, weight, bn_mean, bn_var, bn_gamma, bn_beta,
                       kernel_size=3, *, compute_dtype=jnp.bfloat16):
    """ConvLayer forward (stride=1, dilation=1, groups=1, no bias, dropout=0).
    x_nchw: (N, C_in, H, W).  weight: (C_out, C_in, KH, KW).  Returns compute_dtype."""
    N, C_in, H, W = x_nchw.shape
    C_out = weight.shape[0]
    KH = KW = kernel_size
    pad = kernel_size // 2                       # get_same_padding, dilation=1
    Hp, Wp = H + 2 * pad, W + 2 * pad

    cbytes = jnp.dtype(compute_dtype).itemsize
    obytes = cbytes                              # output in compute_dtype
    sublane = 8 * (4 // cbytes)                  # 8 rows for f32, 16 for bf16
    C_pad = _round_up(C_in, sublane)
    n_taps = KH * KW

    # ---- wrapper glue: cast first, pad channels + halo, flatten (no transposes) ----
    x_pad = jnp.pad(x_nchw.astype(compute_dtype),
                    ((0, 0), (0, C_pad - C_in), (pad, pad), (pad, pad)))
    Lflat = _round_up(Hp * Wp + (KW - 1), 128)   # tail so every tap slice is in-bounds
    x_flat = jnp.pad(x_pad.reshape(N, C_pad, Hp * Wp),
                     ((0, 0), (0, 0), (0, Lflat - Hp * Wp)))

    # Fold BatchNorm2d (inference running stats): scale into the weights (f32,
    # before the bf16 cast); shift stays a tiny f32 vector for the epilogue.
    scale = bn_gamma.astype(jnp.float32) / jnp.sqrt(bn_var.astype(jnp.float32) + BN_EPS)
    shift = (bn_beta.astype(jnp.float32) - bn_mean.astype(jnp.float32) * scale)
    shift = shift.reshape(C_out, 1)

    # Weight-stationary im2col matrix, rows ordered (kh, kw, c_pad), BN-scaled.
    w_mat = jnp.transpose(weight.astype(jnp.float32), (0, 2, 3, 1))   # (C_out,KH,KW,C_in)
    w_mat = jnp.pad(w_mat, ((0, 0), (0, 0), (0, 0), (0, C_pad - C_in)))
    w_mat = (w_mat.reshape(C_out, n_taps * C_pad) * scale[:, None]).astype(compute_dtype)

    # ---- chip-aware VMEM budgeting ----
    vmem_cap = _physical_vmem_bytes()            # 128 MiB v5e/v6e, 64 MiB/TC v7x
    budget = min(24 << 20, vmem_cap // 4)

    res1 = C_pad * Lflat * cbytes                # single-buffered resident image
    in_bufs = 2
    if N == 1 or 2 * res1 > budget:
        # Block index is constant across the row-tile axis; the second buffer only
        # helps at batch boundaries.  Drop it when it dominates VMEM or N == 1.
        in_bufs = 1

    TH = _pick_row_tile(N, H, Wp, Lflat, C_pad, C_out, n_taps, cbytes, obytes,
                        in_bufs, budget)
    n_tiles = H // TH
    L = TH * Wp

    vmem_est = (in_bufs * res1
                + 2 * C_out * n_taps * C_pad * cbytes    # weights (x2 buffers)
                + n_taps * C_pad * L * cbytes            # im2col scratch
                + C_out * L * 4                          # f32 matmul result temp
                + 2 * C_out * L * obytes                 # output (x2 buffers)
                + 2 * C_out * 4)
    vmem_limit = None
    if vmem_est > (12 << 20):                    # v5e default scoped limit is 16 MiB
        vmem_limit = int(min(max(vmem_est * 3 // 2, 16 << 20), vmem_cap * 3 // 4))

    x_spec_kwargs = {}
    if in_bufs == 1:
        x_spec_kwargs = dict(pipeline_mode=pl.Buffered(1))
    x_spec = pl.BlockSpec((1, C_pad, Lflat), lambda n, i: (n, 0, 0), **x_spec_kwargs)

    kernel = functools.partial(_conv_bn_relu_kernel,
                               TH=TH, H=H, Wp=Wp, KH=KH, KW=KW, C_pad=C_pad)

    cost = pl.CostEstimate(
        flops=int(2 * N * H * Wp * C_out * n_taps * C_pad),
        transcendentals=0,
        bytes_accessed=int(x_flat.size * cbytes + w_mat.size * cbytes
                           + shift.size * 4 + N * C_out * H * Wp * obytes))

    out_flat = pl.pallas_call(
        kernel,
        out_shape=jax.ShapeDtypeStruct((N, C_out, H * Wp), compute_dtype),
        grid_spec=pltpu.PrefetchScalarGridSpec(
            num_scalar_prefetch=0,
            grid=(N, n_tiles),
            in_specs=[
                x_spec,                                               # resident image
                pl.BlockSpec((C_out, n_taps * C_pad), lambda n, i: (0, 0)),
                pl.BlockSpec((C_out, 1), lambda n, i: (0, 0)),
            ],
            out_specs=pl.BlockSpec((1, C_out, L), lambda n, i: (n, 0, i)),
            scratch_shapes=[pltpu.VMEM((n_taps * C_pad, L), compute_dtype)],
        ),
        compiler_params=pltpu.CompilerParams(
            dimension_semantics=("parallel", "parallel"),
            vmem_limit_bytes=vmem_limit),
        cost_estimate=cost,
    )(x_flat, w_mat, shift)

    # Drop the (Wp - W) garbage columns per row; layout is already NCHW.
    return out_flat.reshape(N, C_out, H, Wp)[:, :, :, :W]


def _reference(x_nchw, weight, bn_mean, bn_var, bn_gamma, bn_beta,
               compute_dtype=jnp.bfloat16):
    # Pure-JAX reference: same bf16 input/weight quantization as the kernel,
    # f32 convolution + folded BN + ReLU (kernel additionally rounds to bf16).
    xq = x_nchw.astype(compute_dtype).astype(jnp.float32)
    wq = weight.astype(compute_dtype).astype(jnp.float32)
    y = lax.conv_general_dilated(
        xq, wq, window_strides=(1, 1), padding='SAME',
        dimension_numbers=('NCHW', 'OIHW', 'NCHW'),
        precision=lax.Precision.HIGHEST)
    scale = bn_gamma / jnp.sqrt(bn_var + BN_EPS)
    shift = bn_beta - bn_mean * scale
    y = y * scale[None, :, None, None] + shift[None, :, None, None]
    return jnp.maximum(y, 0.0)


if __name__ == "__main__":
    import numpy as np

    # Small shapes consistent with ConvLayer(in_dim=4, out_dim=8, kernel_size=3)
    N, C_in, H, W = 2, 4, 16, 16
    C_out, K = 8, 3

    key = jax.random.PRNGKey(0)
    kx, kw = jax.random.split(key)
    x = jax.random.normal(kx, (N, C_in, H, W), dtype=jnp.float32)
    weight = 0.1 * jax.random.normal(kw, (C_out, C_in, K, K), dtype=jnp.float32)

    # BatchNorm2d parameters at their deterministic PyTorch init values.
    bn_mean = jnp.zeros((C_out,), jnp.float32)    # running_mean
    bn_var = jnp.ones((C_out,), jnp.float32)      # running_var
    bn_gamma = jnp.ones((C_out,), jnp.float32)    # weight
    bn_beta = jnp.zeros((C_out,), jnp.float32)    # bias

    out = conv_layer_forward(x, weight, bn_mean, bn_var, bn_gamma, bn_beta, K)
    out = jax.block_until_ready(out)

    ref = _reference(x, weight, bn_mean, bn_var, bn_gamma, bn_beta)
    # Tolerance loosened for the bf16 output stream (half HBM writeback).
    np.testing.assert_allclose(np.asarray(out.astype(jnp.float32)),
                               np.asarray(ref), rtol=2e-2, atol=2e-2)
    print("KERNEL_OK")
</pallas_src>

<mosaic_0001>
module attributes {stable_mosaic.version = 11 : i64} {
  func.func @_conv_bn_relu_kernel(%arg0: i32, %arg1: i32, %arg2: memref<1x16x384xbf16, #tpu.memory_space<vmem>>, %arg3: memref<8x144xbf16, #tpu.memory_space<vmem>>, %arg4: memref<8x1xf32, #tpu.memory_space<vmem>>, %arg5: memref<1x8x288xbf16, #tpu.memory_space<vmem>>, %arg6: memref<144x288xbf16, #tpu.memory_space<vmem>>) attributes {dimension_semantics = [#tpu.dimension_semantics<parallel>, #tpu.dimension_semantics<parallel>], iteration_bounds = array<i64: 2, 1>, scalar_prefetch = 0 : i64, scratch_operands = 1 : i64, tpu.core_type = #tpu.core_type<tc>, window_params = [{transform_indices = @transform_0, window_bounds = array<i64: 1, 16, 384>}, {pipeline_mode = #tpu.pipeline_mode<synchronous>, transform_indices = @transform_1, window_bounds = array<i64: 8, 144>}, {pipeline_mode = #tpu.pipeline_mode<synchronous>, transform_indices = @transform_2, window_bounds = array<i64: 8, 1>}, {transform_indices = @transform_3, window_bounds = array<i64: 1, 8, 288>}]} {
    %c0 = arith.constant 0 : index
    %c0_0 = arith.constant 0 : index
    %c0_1 = arith.constant 0 : index
    %0 = vector.load %arg2[%c0, %c0_0, %c0_1] : memref<1x16x384xbf16, #tpu.memory_space<vmem>>, vector<1x16x288xbf16>
    %1 = vector.shape_cast %0 : vector<1x16x288xbf16> to vector<16x288xbf16>
    %c0_2 = arith.constant 0 : index
    %c0_3 = arith.constant 0 : index
    %2 = vector.load %arg6[%c0_2, %c0_3] : memref<144x288xbf16, #tpu.memory_space<vmem>>, vector<16x288xbf16>
    tpu.vector_store %arg6[%c0_2, %c0_3], %1 {strides = array<i32>} : memref<144x288xbf16, #tpu.memory_space<vmem>>, vector<16x288xbf16>,
    %c0_4 = arith.constant 0 : index
    %c0_5 = arith.constant 0 : index
    %c1 = arith.constant 1 : index
    %3 = vector.load %arg2[%c0_4, %c0_5, %c1] : memref<1x16x384xbf16, #tpu.memory_space<vmem>>, vector<1x16x288xbf16>
    %4 = vector.shape_cast %3 : vector<1x16x288xbf16> to vector<16x288xbf16>
    %c16 = arith.constant 16 : index
    %c0_6 = arith.constant 0 : index
    %5 = vector.load %arg6[%c16, %c0_6] : memref<144x288xbf16, #tpu.memory_space<vmem>>, vector<16x288xbf16>
    tpu.vector_store %arg6[%c16, %c0_6], %4 {strides = array<i32>} : memref<144x288xbf16, #tpu.memory_space<vmem>>, vector<16x288xbf16>,
    %c0_7 = arith.constant 0 : index
    %c0_8 = arith.constant 0 : index
    %c2 = arith.constant 2 : index
    %6 = vector.load %arg2[%c0_7, %c0_8, %c2] : memref<1x16x384xbf16, #tpu.memory_space<vmem>>, vector<1x16x288xbf16>
    %7 = vector.shape_cast %6 : vector<1x16x288xbf16> to vector<16x288xbf16>
    %c32 = arith.constant 32 : index
    %c0_9 = arith.constant 0 : index
    %8 = vector.load %arg6[%c32, %c0_9] : memref<144x288xbf16, #tpu.memory_space<vmem>>, vector<16x288xbf16>
    tpu.vector_store %arg6[%c32, %c0_9], %7 {strides = array<i32>} : memref<144x288xbf16, #tpu.memory_space<vmem>>, vector<16x288xbf16>,
    %c0_10 = arith.constant 0 : index
    %c0_11 = arith.constant 0 : index
    %c18 = arith.constant 18 : index
    %9 = vector.load %arg2[%c0_10, %c0_11, %c18] : memref<1x16x384xbf16, #tpu.memory_space<vmem>>, vector<1x16x288xbf16>
    %10 = vector.shape_cast %9 : vector<1x16x288xbf16> to vector<16x288xbf16>
    %c48 = arith.constant 48 : index
    %c0_12 = arith.constant 0 : index
    %11 = vector.load %arg6[%c48, %c0_12] : memref<144x288xbf16, #tpu.memory_space<vmem>>, vector<16x288xbf16>
    tpu.vector_store %arg6[%c48, %c0_12], %10 {strides = array<i32>} : memref<144x288xbf16, #tpu.memory_space<vmem>>, vector<16x288xbf16>,
    %c0_13 = arith.constant 0 : index
    %c0_14 = arith.constant 0 : index
    %c19 = arith.constant 19 : index
    %12 = vector.load %arg2[%c0_13, %c0_14, %c19] : memref<1x16x384xbf16, #tpu.memory_space<vmem>>, vector<1x16x288xbf16>
    %13 = vector.shape_cast %12 : vector<1x16x288xbf16> to vector<16x288xbf16>
    %c64 = arith.constant 64 : index
    %c0_15 = arith.constant 0 : index
    %14 = vector.load %arg6[%c64, %c0_15] : memref<144x288xbf16, #tpu.memory_space<vmem>>, vector<16x288xbf16>
    tpu.vector_store %arg6[%c64, %c0_15], %13 {strides = array<i32>} : memref<144x288xbf16, #tpu.memory_space<vmem>>, vector<16x288xbf16>,
    %c0_16 = arith.constant 0 : index
    %c0_17 = arith.constant 0 : index
    %c20 = arith.constant 20 : index
    %15 = vector.load %arg2[%c0_16, %c0_17, %c20] : memref<1x16x384xbf16, #tpu.memory_space<vmem>>, vector<1x16x288xbf16>
    %16 = vector.shape_cast %15 : vector<1x16x288xbf16> to vector<16x288xbf16>
    %c80 = arith.constant 80 : index
    %c0_18 = arith.constant 0 : index
    %17 = vector.load %arg6[%c80, %c0_18] : memref<144x288xbf16, #tpu.memory_space<vmem>>, vector<16x288xbf16>
    tpu.vector_store %arg6[%c80, %c0_18], %16 {strides = array<i32>} : memref<144x288xbf16, #tpu.memory_space<vmem>>, vector<16x288xbf16>,
    %c0_19 = arith.constant 0 : index
    %c0_20 = arith.constant 0 : index
    %c36 = arith.constant 36 : index
    %18 = vector.load %arg2[%c0_19, %c0_20, %c36] : memref<1x16x384xbf16, #tpu.memory_space<vmem>>, vector<1x16x288xbf16>
    %19 = vector.shape_cast %18 : vector<1x16x288xbf16> to vector<16x288xbf16>
    %c96 = arith.constant 96 : index
    %c0_21 = arith.constant 0 : index
    %20 = vector.load %arg6[%c96, %c0_21] : memref<144x288xbf16, #tpu.memory_space<vmem>>, vector<16x288xbf16>
    tpu.vector_store %arg6[%c96, %c0_21], %19 {strides = array<i32>} : memref<144x288xbf16, #tpu.memory_space<vmem>>, vector<16x288xbf16>,
    %c0_22 = arith.constant 0 : index
    %c0_23 = arith.constant 0 : index
    %c37 = arith.constant 37 : index
    %21 = vector.load %arg2[%c0_22, %c0_23, %c37] : memref<1x16x384xbf16, #tpu.memory_space<vmem>>, vector<1x16x288xbf16>
    %22 = vector.shape_cast %21 : vector<1x16x288xbf16> to vector<16x288xbf16>
    %c112 = arith.constant 112 : index
    %c0_24 = arith.constant 0 : index
    %23 = vector.load %arg6[%c112, %c0_24] : memref<144x288xbf16, #tpu.memory_space<vmem>>, vector<16x288xbf16>
    tpu.vector_store %arg6[%c112, %c0_24], %22 {strides = array<i32>} : memref<144x288xbf16, #tpu.memory_space<vmem>>, vector<16x288xbf16>,
    %c0_25 = arith.constant 0 : index
    %c0_26 = arith.constant 0 : index
    %c38 = arith.constant 38 : index
    %24 = vector.load %arg2[%c0_25, %c0_26, %c38] : memref<1x16x384xbf16, #tpu.memory_space<vmem>>, vector<1x16x288xbf16>
    %25 = vector.shape_cast %24 : vector<1x16x288xbf16> to vector<16x288xbf16>
    %c128 = arith.constant 128 : index
    %c0_27 = arith.constant 0 : index
    %26 = vector.load %arg6[%c128, %c0_27] : memref<144x288xbf16, #tpu.memory_space<vmem>>, vector<16x288xbf16>
    tpu.vector_store %arg6[%c128, %c0_27], %25 {strides = array<i32>} : memref<144x288xbf16, #tpu.memory_space<vmem>>, vector<16x288xbf16>,
    %c0_28 = arith.constant 0 : index
    %c0_29 = arith.constant 0 : index
    %27 = vector.load %arg3[%c0_28, %c0_29] : memref<8x144xbf16, #tpu.memory_space<vmem>>, vector<8x144xbf16>
    %c0_30 = arith.constant 0 : index
    %c0_31 = arith.constant 0 : index
    %28 = vector.load %arg6[%c0_30, %c0_31] : memref<144x288xbf16, #tpu.memory_space<vmem>>, vector<144x288xbf16>
    %cst = arith.constant dense<0.000000e+00> : vector<8x288xf32>
    %29 = tpu.matmul %27, %28, %cst {dimension_numbers = #tpu.dot_dimension_numbers<[1], [0], [0], [1], [0, 0, 1, 1], [], []>} : vector<8x144xbf16>, vector<144x288xbf16>, vector<8x288xf32> -> vector<8x288xf32>
    %c0_32 = arith.constant 0 : index
    %c0_33 = arith.constant 0 : index
    %30 = vector.load %arg4[%c0_32, %c0_33] : memref<8x1xf32, #tpu.memory_space<vmem>>, vector<8x1xf32>
    %31 = vector.broadcast %30 : vector<8x1xf32> to vector<8x288xf32>
    %32 = arith.addf %29, %31 : vector<8x288xf32>
    %cst_34 = arith.constant 0.000000e+00 : f32
    %33 = vector.broadcast %cst_34 : f32 to vector<8x288xf32>
    %34 = arith.maximumf %32, %33 : vector<8x288xf32>
    %35 = arith.truncf %34 : vector<8x288xf32> to vector<8x288xbf16>
    %c0_35 = arith.constant 0 : index
    %c0_36 = arith.constant 0 : index
    %c0_37 = arith.constant 0 : index
    %36 = vector.load %arg5[%c0_35, %c0_36, %c0_37] : memref<1x8x288xbf16, #tpu.memory_space<vmem>>, vector<1x8x288xbf16>
    %37 = vector.shape_cast %36 : vector<1x8x288xbf16> to vector<8x288xbf16>
    %38 = vector.shape_cast %35 : vector<8x288xbf16> to vector<1x8x288xbf16>
    tpu.vector_store %arg5[%c0_35, %c0_36, %c0_37], %38 {strides = array<i32>} : memref<1x8x288xbf16, #tpu.memory_space<vmem>>, vector<1x8x288xbf16>,
    return
  }
  func.func @transform_0(%arg0: i32, %arg1: i32) -> (i32, i32, i32) {
    %c0_i32 = arith.constant 0 : i32
    %c0_i32_0 = arith.constant 0 : i32
    %c0_i32_1 = arith.constant 0 : i32
    return %arg0, %c0_i32, %c0_i32_0 : i32, i32, i32
  }
  func.func @transform_1(%arg0: i32, %arg1: i32) -> (i32, i32) {
    %c0_i32 = arith.constant 0 : i32
    %c0_i32_0 = arith.constant 0 : i32
    %c0_i32_1 = arith.constant 0 : i32
    return %c0_i32, %c0_i32_0 : i32, i32
  }
  func.func @transform_2(%arg0: i32, %arg1: i32) -> (i32, i32) {
    %c0_i32 = arith.constant 0 : i32
    %c0_i32_0 = arith.constant 0 : i32
    %c0_i32_1 = arith.constant 0 : i32
    return %c0_i32, %c0_i32_0 : i32, i32
  }
  func.func @transform_3(%arg0: i32, %arg1: i32) -> (i32, i32, i32) {
    %c0_i32 = arith.constant 0 : i32
    %c0_i32_0 = arith.constant 0 : i32
    return %arg0, %c0_i32, %arg1 : i32, i32, i32
  }
}

</mosaic_0001>

<bundles_post_ra>
// kernel: tpu_custom_call.1
= control target key start
LH: loop header
LB: loop body
LE: loop exit
PB: predicated region body
PF: predicated region fallthrough
CT: control target
= control target key end

     0   :  { %8 = vsyncpa [#allocation4], 0  ;;  %s1418_s0 = inlined_call_operand.hbm [shape: bf16[2,16,384], index: 0, kind: input, shape index: {}]   ;;  %s1419_s1 = inlined_call_operand.vmem [shape: bf16[8,144], index: 1, kind: input, shape index: {}]   ;;  %s1420_s2 = inlined_call_operand.vmem [shape: f32[8,1], index: 2, kind: input, shape index: {}]   ;;  %s1421_s3 = inlined_call_operand.hbm [shape: bf16[2,8,288], index: 3, kind: output, shape index: {}]  }
   0x1   :  { %10 = vsyncpa [#allocation4 + $0x1], 0 }
   0x2   :  { %11 = vsyncpa [#allocation5], 0 }
   0x3   :  { %13 = vsyncpa [#allocation5 + $0x1], 0  ;;  %s1150_s12 = smov 0   ;;  %s1152_s13 = smov 0  }
   0x4   :  { %s1154_s14 = smov 0   ;;  %s1156_s15 = smov 0  }
   0x5   :  { %s1158_s16 = smov 0   ;;  %s1160_s17 = smov 0  }
   0x6 LB: > { %s873_s18 = sadd.s32 4294967295, %s1115_s17   ;;  %s874_s19 = sadd.s32 4294967294, %s1115_s17   ;;  %s1115_s17 = sphi %s1160_s17, %s19_s17   ;;  %s1111_s16 = sphi %s1158_s16, %s1432_s16   ;;  %s1107_s15 = sphi %s1156_s15, %s1431_s15   ;;  %s1103_s14 = sphi %s1154_s14, %s1430_s14   ;;  %s1099_s13 = sphi %s1152_s13, %s1429_s13   ;;  %s1095_s12 = sphi %s1150_s12, %s1428_s12  }
   0x7   : > { %s31_s20 = sadd.s32 1, %s1111_s16  ;;  %s38_s21 = sadd.s32 1, %s1103_s14 }
   0x8   : > { %p33_p0 = scmp.ge.s32.totalorder %s31_s20, 2  ;;  %p45_p1 = scmp.ne.s32.totalorder %s1103_s14, %s1099_s13 }
   0x9   : > { %p46_p2 = scmp.eq.s32.totalorder %s1115_s17, 0  ;;  %p51_p3 = scmp.ne.s32.totalorder %s1099_s13, %s1095_s12 }
   0xa   : > { %s1434_s20 = smov (%p33_p0, %s31_s20), 0  ;;  %p52_p5 = scmp.eq.s32.totalorder %s873_s18, 0 }
   0xb   : > { %p1191_p4 = por %p46_p2, %p45_p1  ;;  %s35_s23 = ssub.s32 %s1111_s16, %s1434_s20 }
   0xc   : > { %p119_p6 = scmp.eq.s32.totalorder %s873_s18, 1  ;;  %p36_p7 = scmp.eq.s32.totalorder %s35_s23, 0 }
   0xd   : > { %p1197_p8 = por %p52_p5, %p51_p3  ;;  %p125_p10 = scmp.eq.s32.totalorder %s874_s19, 1 }
   0xe   : > { %p1201_p9 = por %p119_p6, %p45_p1  ;;  %p934_p13 = scmp.lt.s32.totalorder %s1115_s17, 2 }
   0xf   : > { %s1206_s26 = scalar_select %p36_p7, %s1103_s14, %s38_s21  }
  0x10   : > { %p1208_p11 = por %p125_p10, %p51_p3  ;;  %s151_s28 = sand.u32 1, %s1103_s14  }
  0x11   : > { %s917_s29 = smul.u32 24, %s151_s28  ;;  %p1218_p0 = pnand %p934_p13, %p1191_p4 }
  0x12   : > { %s918_s30 = smul.u32 384, %s1111_s16  ;;  %p878_p1 = scmp.ge.s32.totalorder %s1115_s17, 1 }
  0x13   : > { %s155_s8 = scalar_lea.vmem [#allocation3], %s917_s29  ;;  %s152_s10 = scalar_lea.sflag [#allocation4], %s151_s28 }
  0x14   : > { %s161_s7 = scalar_lea.hbm %s1418_s0, %s918_s30  ;;  %s162_s9 = sshll.u32 %s155_s8, 4  ;;  %s163_s9 = int_to_ptr.vmem [resolvable:$true] %s162_s9 }
  0x15   : > { %p1009_p2 = pneg %p1218_p0  ;;  %s1020_s11 = scalar_lea.vmem %s163_s9, 384 }
  0x16   : > { %p1021_p3 = scmp.ne.s32.totalorder %s163_s9, %s1020_s11  ;;  %s1117_s18 = smov [#allocation3]  }
  0x17   : > { %s1025_s19 = sshll.u32 %s1117_s18, 4  ;;  %s1026_s19 = int_to_ptr.vmem [resolvable:$false] %s1025_s19 }
  0x18   : > { %p1023_p5 = pnand %p1021_p3, %p1009_p2  ;;  %s1027_s21 = scalar_lea.vmem %s1026_s19, 768 }
  0x19   : > { %p1028_p4 = scmp.lt.s32.totalorder %s163_s9, %s1026_s19  ;;  %p1029_p7 = scmp.lt.s32.totalorder %s1027_s21, %s1020_s11 }
  0x1a   : > { %p1024_p6 = pneg %p1023_p5 }
  0x1b   : > { %p1030_p10 = por %p1029_p7, %p1028_p4 }
  0x1d   : > { %p1031_p13 = pnand %p1030_p10, %p1024_p6 }
  0x1f   : > { %1034 = shalt.err (!%p1031_p13)
}
  0x20   : > { %s1118_s22 = smov 192   ;;  %s1119_s23 = smov 12  }
  0x21   : > { %929 = dma.hbm_to_vmem [thread:$0]  (!%p1218_p0), %s161_s7, 384, %s163_s9, %s152_s10, %s1118_s22, %s1118_s22, %s1119_s23  }
  0x22   : > { %p170_p12 = scmp.lt.s32.totalorder %s1115_s17, 3 }
  0x24   : > { %p171_p2 = pnand %p878_p1, %p170_p12 }
  0x25   : > { %s1234_s28 = sand.u32 (!%p171_p2), 1, %s1099_s13  }
  0x26   : > { %174 = sbr.rel (%p171_p2) target bundleno = 445 (0x1bd), region = 32  ;;  %s177_s30 = scalar_lea.sflag (!%p171_p2), [#allocation4], %s1234_s28 }
  0x27   : > { %s919_s29 = smul.u32 (!%p171_p2), 24, %s1234_s28 }
  0x29   : > { %s1238_s5 = scalar_lea.vmem (!%p171_p2), [#allocation3], %s919_s29 }
  0x2b   : > { %1086 = dma.done.wait (%p1197_p8), %s177_s30, 384  }
  0x2c   : > { %1088 = vsyncadd (%p1197_p8), %s177_s30, 4294966912  ;;  %v1245_v0 = vld [vmem:[%s1238_s5 + $0xc] sm:$0xff]  ;;  %v1248_v1 = vld [vmem:[%s1238_s5] sm:$0xff]  ;;  %v1120_v2 = vmov 0   ;;  %s1121_s4 = smov 91   ;;  %s1122_s24 = smov 92  }
  0x2d   : > { %717 = vmatprep.subr.bf16.mxu1 %v1120_v2  ;;  %995 = vset.pattern.permute.xlu0 %v1120_v2  ;;  %v416_v3 = vld [vmem:[%s1238_s5 + $0x14] sm:$0xf]  ;;  %v414_v4 = vld [vmem:[%s1238_s5 + $0x8] sm:$0xf]  ;;  %s1123_s6 = smov 108   ;;  %s1124_s7 = smov 109   ;;  %v882_v18 = vcombine.high %v1248_v1, %v1245_v0  ;;  %v881_v19 = vcombine.low %v1248_v1, %v1245_v0 }
  0x2e   : > { %425 = vrot.lane.b32.xlu1 %v1245_v0, %s1121_s4  ;;  %421 = vrot.lane.b32.xlu0 %v1248_v1, %s1121_s4  ;;  %v381_v5 = vld [vmem:[%s1238_s5 + $0x8] sm:$0xf]  ;;  %v383_v6 = vld [vmem:[%s1238_s5 + $0x14] sm:$0xf]  ;;  %s1125_s8 = smov 110   ;;  %s1126_s9 = smov 126  }
  0x2f   : > { %v348_v7 = vld [vmem:[%s1238_s5 + $0x8] sm:$0xf]  ;;  %v350_v8 = vld [vmem:[%s1238_s5 + $0x14] sm:$0xf]  ;;  %vm210_vm0 = vcmask 257024   ;;  %s1127_s10 = smov 127  }
  0x30   : > { %v315_v9 = vld [vmem:[%s1238_s5 + $0x8] sm:$0xf]  ;;  %v317_v10 = vld [vmem:[%s1238_s5 + $0x14] sm:$0xf]  ;;  %vm672_vm1 = vcmask 130048   ;;  %s1128_s19 = smov 90  }
  0x31   : > { %v282_v11 = vld [vmem:[%s1238_s5 + $0x8] sm:$0xf]  ;;  %v284_v12 = vld [vmem:[%s1238_s5 + $0x14] sm:$0xf]  ;;  %vm234_vm2 = vcmask 1043456   ;;  %vm434_vm3 = vcmask 744448  }
  0x32   : > { %427 = vrot.lane.b32.xlu1 %v416_v3, %s1121_s4  ;;  %423 = vrot.lane.b32.xlu0 %v414_v4, %s1121_s4  ;;  %v249_v13 = vld [vmem:[%s1238_s5 + $0x8] sm:$0xf]  ;;  %v251_v14 = vld [vmem:[%s1238_s5 + $0x14] sm:$0xf]  ;;  %vm401_vm4 = vcmask 752640   ;;  %vm368_vm5 = vcmask 883712  }
  0x33   : > { %v206_v15 = vld [vmem:[%s1238_s5 + $0x8] sm:$0xf]  ;;  %v208_v16 = vld [vmem:[%s1238_s5 + $0x14] sm:$0xf]  ;;  %vm335_vm6 = vcmask 891904   ;;  %vm302_vm7 = vcmask 900096  }
  0x34   : > { %211 = vst.msk [vmem:[#allocation2 + $0x8] sm:$0xf] %vm210_vm0, %v206_v15  ;;  %213 = vst.msk [vmem:[#allocation2 + $0x14] sm:$0xf] %vm210_vm0, %v208_v16  ;;  %v215_v17 = vld [vmem:[%s1238_s5 + $0x8] sm:$0xf] }
  0x35   : > { %v217_v20 = vld [vmem:[%s1238_s5 + $0x14] sm:$0xf]  ;;  %v447_v21 = vld [vmem:[%s1238_s5 + $0x8] sm:$0xf]  ;;  %vm269_vm8 = vcmask 1031168   ;;  %vm236_vm9 = vcmask 1039360  }
  0x36   : > { %390 = vrot.lane.b32.xlu1 %v381_v5, %s1122_s24  ;;  %388 = vrot.lane.b32.xlu0 %v1248_v1, %s1122_s24  ;;  %v1292_v22 = vld [vmem:[%s1419_s1] sm:$0xff]  ;;  %vm467_vm10 = vcmask 736256   ;;  %s920_s23 = smul.u32 12, %s1234_s28 }
  0x37   : > { %v880_v23 = vcombine.high %v1292_v22, %v1292_v22  ;;  %v449_v24 = vld [vmem:[%s1238_s5 + $0x14] sm:$0xf]  ;;  %s921_s29 = smul.u32 192, %s1107_s15  ;;  %s776_s15 = scalar_lea.sflag [#allocation5], %s1234_s28 }
  0x38   : > { %v516_v25 = vld [vmem:[%s1420_s2] sm:$0xff]  ;;  %s202_s30 = scalar_lea.vmem [#allocation6], %s920_s23 }
  0x39   : > { %909 = vmatprep.mubr.msk.bf16.mxu1 %vm672_vm1, %v880_v23  ;;  %908 = vmatprep.mubr.msk.bf16.mxu0 %vm672_vm1, %v880_v23  ;;  %s792_s5 = sshll.u32 %s202_s30, 4  ;;  %s1371_s5 = int_to_ptr.vmem [resolvable:$true] %s792_s5 }
  0x3a   : > { %394 = vrot.lane.b32.xlu1 %v383_v6, %s1122_s24  ;;  %392 = vrot.lane.b32.xlu0 %v1245_v0, %s1122_s24 }
  0x3e   : > { %357 = vrot.lane.b32.xlu1 %v348_v7, %s1123_s6  ;;  %355 = vrot.lane.b32.xlu0 %v1248_v1, %s1123_s6 }
  0x42   : > { %361 = vrot.lane.b32.xlu1 %v350_v8, %s1123_s6  ;;  %359 = vrot.lane.b32.xlu0 %v1245_v0, %s1123_s6  ;;  %s1369_s6 = scalar_lea.hbm %s1421_s3, %s921_s29 }
  0x46   : > { %324 = vrot.lane.b32.xlu1 %v315_v9, %s1124_s7  ;;  %322 = vrot.lane.b32.xlu0 %v1248_v1, %s1124_s7 }
  0x4a   : > { %328 = vrot.lane.b32.xlu1 %v317_v10, %s1124_s7  ;;  %326 = vrot.lane.b32.xlu0 %v1245_v0, %s1124_s7  ;;  %s1035_s7 = scalar_lea.vmem %s1371_s5, 192 }
  0x4b   : > { %p1036_p8 = scmp.ne.s32.totalorder %s1371_s5, %s1035_s7 }
  0x4d   : > { %p1037_p12 = pnand %p1036_p8, %p1201_p9 }
  0x4e   : > { %291 = vrot.lane.b32.xlu1 %v282_v11, %s1125_s8  ;;  %289 = vrot.lane.b32.xlu0 %v1248_v1, %s1125_s8 }
  0x4f   : > { %p1038_p0 = pneg %p1037_p12 }
  0x52   : > { %295 = vrot.lane.b32.xlu1 %v284_v12, %s1125_s8  ;;  %293 = vrot.lane.b32.xlu0 %v1245_v0, %s1125_s8  ;;  %s1129_s8 = smov [#allocation6]  }
  0x56   : > { %258 = vrot.lane.b32.xlu1 %v249_v13, %s1126_s9  ;;  %256 = vrot.lane.b32.xlu0 %v1248_v1, %s1126_s9 }
  0x5a   : > { %262 = vrot.lane.b32.xlu1 %v251_v14, %s1126_s9  ;;  %260 = vrot.lane.b32.xlu0 %v1245_v0, %s1126_s9  ;;  %s1039_s9 = sshll.u32 %s1129_s8, 4  ;;  %s1040_s9 = int_to_ptr.vmem [resolvable:$false] %s1039_s9 }
  0x5b   : > { %p1042_p1 = scmp.lt.s32.totalorder %s1371_s5, %s1040_s9 }
  0x5e   : > { %224 = vrot.lane.b32.xlu1 %v215_v17, %s1127_s10  ;;  %222 = vrot.lane.b32.xlu0 %v1248_v1, %s1127_s10 }
  0x62   : > { %228 = vrot.lane.b32.xlu1 %v217_v20, %s1127_s10  ;;  %226 = vrot.lane.b32.xlu0 %v1245_v0, %s1127_s10  ;;  %s1041_s10 = scalar_lea.vmem %s1040_s9, 384 }
  0x63   : > { %p1043_p3 = scmp.lt.s32.totalorder %s1041_s10, %s1035_s7 }
  0x65   : > { %p1044_p5 = por %p1043_p3, %p1042_p1 }
  0x66   : > { %456 = vrot.lane.b32.xlu1 %v447_v21, %s1128_s19  ;;  %454 = vrot.lane.b32.xlu0 %v1248_v1, %s1128_s19 }
  0x67   : > { %p1045_p6 = pnand %p1044_p5, %p1038_p0 }
  0x6a   : > { %460 = vrot.lane.b32.xlu1 %v449_v24, %s1128_s19  ;;  %458 = vrot.lane.b32.xlu0 %v1245_v0, %s1128_s19 }
  0x6e   : > { %519 = vperm.xlu0 %995, %v516_v25  }
  0xa0   : > { %v426_v26 = vpop.permute.xlu1 %425  ;;  %v422_v27 = vpop.permute.xlu0 %421 }
  0xa1   : > { %v431_v30 = vrot.slane %v426_v26, 4  ;;  %v429_v31 = vrot.slane %v422_v27, 4 }
  0xa4   : > { %v428_v28 = vpop.permute.xlu1 %427  ;;  %v424_v29 = vpop.permute.xlu0 %423 }
  0xa5   : > { %v432_v32 = vrot.slane %v428_v28, 4  ;;  %445 = vst.msk [vmem:[#allocation2 + $0xbc] sm:$0xf] %vm210_vm0, %v428_v28  ;;  %v430_v33 = vrot.slane %v424_v29, 4  ;;  %443 = vst.msk [vmem:[#allocation2 + $0xb0] sm:$0xf] %vm210_vm0, %v424_v29 }
  0xa7   : > { %v436_v34 = vsel %vm234_vm2, %v431_v30, %v432_v32  ;;  %v433_v35 = vsel %vm234_vm2, %v429_v31, %v430_v33 }
  0xa8   : > { %v437_v36 = vsel %vm434_vm3, %v426_v26, %v436_v34  ;;  %v435_v37 = vsel %vm434_vm3, %v422_v27, %v433_v35  ;;  %v391_v38 = vpop.permute.xlu1 %390  ;;  %v389_v39 = vpop.permute.xlu0 %388 }
  0xa9   : > { %v397_v40 = vrot.slane %v391_v38, 4  ;;  %410 = vst.msk [vmem:[#allocation2 + $0x98] sm:$0xf] %vm210_vm0, %v391_v38  ;;  %v396_v41 = vrot.slane %v389_v39, 4  ;;  %v903_v42 = vcombine.high %v435_v37, %v437_v36  ;;  %v902_v43 = vcombine.low %v435_v37, %v437_v36 }
  0xab   : > { %v400_v44 = vsel %vm234_vm2, %v396_v41, %v397_v40  ;;  %676 = vmatprep.subr.bf16.mxu0 %v903_v42 }
  0xac   : > { %v402_v45 = vsel %vm401_vm4, %v389_v39, %v400_v44  ;;  %v395_v46 = vpop.permute.xlu1 %394  ;;  %v393_v47 = vpop.permute.xlu0 %392  ;;  %v996_v48 = vld [vmem:[#allocation2 + $0xb0] ss:$12 sps:$4 sm:$0xff]   ;;  %677 = vmatpush1.bf16.msra.mxu0 %v902_v43 }
  0xad   : > { %v399_v49 = vrot.slane %v395_v46, 4  ;;  %412 = vst.msk [vmem:[#allocation2 + $0xa4] sm:$0xf] %vm210_vm0, %v395_v46  ;;  %v398_v50 = vrot.slane %v393_v47, 4  ;;  %718 = vmatpush1.bf16.msra.mxu1 %v996_v48 }
  0xae   : > { %719 = vmatprep.subr.bf16.mxu1 %v1120_v2 }
  0xaf   : > { %v403_v51 = vsel %vm234_vm2, %v398_v50, %v399_v49 }
  0xb0   : > { %v404_v52 = vsel %vm401_vm4, %v393_v47, %v403_v51  ;;  %v358_v53 = vpop.permute.xlu1 %357  ;;  %v356_v54 = vpop.permute.xlu0 %355 }
  0xb1   : > { %v364_v55 = vrot.slane %v358_v53, 4  ;;  %377 = vst.msk [vmem:[#allocation2 + $0x80] sm:$0xf] %vm210_vm0, %v358_v53  ;;  %v363_v56 = vrot.slane %v356_v54, 4  ;;  %v900_v57 = vcombine.high %v402_v45, %v404_v52  ;;  %v899_v58 = vcombine.low %v402_v45, %v404_v52 }
  0xb3   : > { %v367_v59 = vsel %vm234_vm2, %v363_v56, %v364_v55  ;;  %678 = vmatprep.subr.bf16.mxu0 %v900_v57 }
  0xb4   : > { %v369_v60 = vsel %vm368_vm5, %v356_v54, %v367_v59  ;;  %v362_v61 = vpop.permute.xlu1 %361  ;;  %v360_v62 = vpop.permute.xlu0 %359  ;;  %v997_v63 = vld [vmem:[#allocation2 + $0x98] ss:$12 sps:$4 sm:$0xff]   ;;  %679 = vmatpush1.bf16.msra.mxu0 %v899_v58 }
  0xb5   : > { %v366_v3 = vrot.slane %v362_v61, 4  ;;  %379 = vst.msk [vmem:[#allocation2 + $0x8c] sm:$0xf] %vm210_vm0, %v362_v61  ;;  %v365_v4 = vrot.slane %v360_v62, 4  ;;  %720 = vmatpush1.bf16.msra.mxu1 %v997_v63 }
  0xb6   : > { %721 = vmatprep.subr.bf16.mxu1 %v1120_v2 }
  0xb7   : > { %v370_v5 = vsel %vm234_vm2, %v365_v4, %v366_v3 }
  0xb8   : > { %v371_v6 = vsel %vm368_vm5, %v360_v62, %v370_v5  ;;  %v325_v7 = vpop.permute.xlu1 %324  ;;  %v323_v8 = vpop.permute.xlu0 %322 }
  0xb9   : > { %v331_v9 = vrot.slane %v325_v7, 4  ;;  %344 = vst.msk [vmem:[#allocation2 + $0x68] sm:$0xf] %vm210_vm0, %v325_v7  ;;  %v330_v10 = vrot.slane %v323_v8, 4  ;;  %v897_v11 = vcombine.high %v369_v60, %v371_v6  ;;  %v896_v12 = vcombine.low %v369_v60, %v371_v6 }
  0xbb   : > { %v334_v13 = vsel %vm234_vm2, %v330_v10, %v331_v9  ;;  %680 = vmatprep.subr.bf16.mxu0 %v897_v11 }
  0xbc   : > { %v336_v14 = vsel %vm335_vm6, %v323_v8, %v334_v13  ;;  %v329_v15 = vpop.permute.xlu1 %328  ;;  %v327_v16 = vpop.permute.xlu0 %326  ;;  %v998_v17 = vld [vmem:[#allocation2 + $0x80] ss:$12 sps:$4 sm:$0xff]   ;;  %681 = vmatpush1.bf16.msra.mxu0 %v896_v12 }
  0xbd   : > { %v333_v20 = vrot.slane %v329_v15, 4  ;;  %346 = vst.msk [vmem:[#allocation2 + $0x74] sm:$0xf] %vm210_vm0, %v329_v15  ;;  %v332_v21 = vrot.slane %v327_v16, 4  ;;  %722 = vmatpush1.bf16.msra.mxu1 %v998_v17 }
  0xbe   : > { %723 = vmatprep.subr.bf16.mxu1 %v1120_v2 }
  0xbf   : > { %v337_v23 = vsel %vm234_vm2, %v332_v21, %v333_v20 }
  0xc0   : > { %v338_v24 = vsel %vm335_vm6, %v327_v16, %v337_v23  ;;  %v292_v25 = vpop.permute.xlu1 %291  ;;  %v290_v26 = vpop.permute.xlu0 %289 }
  0xc1   : > { %v298_v27 = vrot.slane %v292_v25, 4  ;;  %311 = vst.msk [vmem:[#allocation2 + $0x50] sm:$0xf] %vm210_vm0, %v292_v25  ;;  %v297_v28 = vrot.slane %v290_v26, 4  ;;  %v894_v29 = vcombine.high %v336_v14, %v338_v24  ;;  %v893_v30 = vcombine.low %v336_v14, %v338_v24  ;;  %v1003_v25 = vld [vmem:[#allocation2 + $0x8] ss:$12 sps:$4 sm:$0xff]  }
  0xc3   : > { %v301_v31 = vsel %vm234_vm2, %v297_v28, %v298_v27  ;;  %682 = vmatprep.subr.bf16.mxu0 %v894_v29 }
  0xc4   : > { %v303_v32 = vsel %vm302_vm7, %v290_v26, %v301_v31  ;;  %v296_v33 = vpop.permute.xlu1 %295  ;;  %v294_v34 = vpop.permute.xlu0 %293  ;;  %v999_v35 = vld [vmem:[#allocation2 + $0x68] ss:$12 sps:$4 sm:$0xff]   ;;  %683 = vmatpush1.bf16.msra.mxu0 %v893_v30 }
  0xc5   : > { %v300_v36 = vrot.slane %v296_v33, 4  ;;  %313 = vst.msk [vmem:[#allocation2 + $0x5c] sm:$0xf] %vm210_vm0, %v296_v33  ;;  %v299_v37 = vrot.slane %v294_v34, 4  ;;  %724 = vmatpush1.bf16.msra.mxu1 %v999_v35 }
  0xc6   : > { %725 = vmatprep.subr.bf16.mxu1 %v1120_v2 }
  0xc7   : > { %v304_v38 = vsel %vm234_vm2, %v299_v37, %v300_v36 }
  0xc8   : > { %v305_v39 = vsel %vm302_vm7, %v294_v34, %v304_v38  ;;  %v259_v40 = vpop.permute.xlu1 %258  ;;  %v257_v41 = vpop.permute.xlu0 %256 }
  0xc9   : > { %v265_v42 = vrot.slane %v259_v40, 4  ;;  %278 = vst.msk [vmem:[#allocation2 + $0x38] sm:$0xf] %vm210_vm0, %v259_v40  ;;  %v264_v43 = vrot.slane %v257_v41, 4  ;;  %v891_v44 = vcombine.high %v303_v32, %v305_v39  ;;  %v890_v45 = vcombine.low %v303_v32, %v305_v39 }
  0xcb   : > { %v268_v46 = vsel %vm234_vm2, %v264_v43, %v265_v42  ;;  %684 = vmatprep.subr.bf16.mxu0 %v891_v44 }
  0xcc   : > { %v270_v47 = vsel %vm269_vm8, %v257_v41, %v268_v46  ;;  %v263_v48 = vpop.permute.xlu1 %262  ;;  %v261_v49 = vpop.permute.xlu0 %260  ;;  %v1000_v50 = vld [vmem:[#allocation2 + $0x50] ss:$12 sps:$4 sm:$0xff]   ;;  %685 = vmatpush1.bf16.msra.mxu0 %v890_v45 }
  0xcd   : > { %v267_v51 = vrot.slane %v263_v48, 4  ;;  %280 = vst.msk [vmem:[#allocation2 + $0x44] sm:$0xf] %vm210_vm0, %v263_v48  ;;  %v266_v52 = vrot.slane %v261_v49, 4  ;;  %726 = vmatpush1.bf16.msra.mxu1 %v1000_v50 }
  0xce   : > { %727 = vmatprep.subr.bf16.mxu1 %v1120_v2 }
  0xcf   : > { %v271_v53 = vsel %vm234_vm2, %v266_v52, %v267_v51 }
  0xd0   : > { %v272_v54 = vsel %vm269_vm8, %v261_v49, %v271_v53  ;;  %v225_v55 = vpop.permute.xlu1 %224  ;;  %v223_v56 = vpop.permute.xlu0 %222 }
  0xd1   : > { %v231_v57 = vrot.slane %v225_v55, 4  ;;  %245 = vst.msk [vmem:[#allocation2 + $0x20] sm:$0xf] %vm210_vm0, %v225_v55  ;;  %v230_v58 = vrot.slane %v223_v56, 4  ;;  %v888_v59 = vcombine.high %v270_v47, %v272_v54  ;;  %v887_v60 = vcombine.low %v270_v47, %v272_v54 }
  0xd3   : > { %v235_v61 = vsel %vm234_vm2, %v230_v58, %v231_v57  ;;  %686 = vmatprep.subr.bf16.mxu0 %v888_v59 }
  0xd4   : > { %v237_v62 = vsel %vm236_vm9, %v223_v56, %v235_v61  ;;  %v229_v63 = vpop.permute.xlu1 %228  ;;  %v227_v3 = vpop.permute.xlu0 %226  ;;  %v1001_v4 = vld [vmem:[#allocation2 + $0x38] ss:$12 sps:$4 sm:$0xff]   ;;  %687 = vmatpush1.bf16.msra.mxu0 %v887_v60 }
  0xd5   : > { %v233_v5 = vrot.slane %v229_v63, 4  ;;  %247 = vst.msk [vmem:[#allocation2 + $0x2c] sm:$0xf] %vm210_vm0, %v229_v63  ;;  %v232_v6 = vrot.slane %v227_v3, 4  ;;  %728 = vmatpush1.bf16.msra.mxu1 %v1001_v4 }
  0xd6   : > { %729 = vmatprep.subr.bf16.mxu1 %v1120_v2 }
  0xd7   : > { %v238_v7 = vsel %vm234_vm2, %v232_v6, %v233_v5 }
  0xd8   : > { %v239_v8 = vsel %vm236_vm9, %v227_v3, %v238_v7  ;;  %v457_v9 = vpop.permute.xlu1 %456  ;;  %v455_v10 = vpop.permute.xlu0 %454 }
  0xd9   : > { %v463_v11 = vrot.slane %v457_v9, 4  ;;  %476 = vst.msk [vmem:[#allocation2 + $0xc8] sm:$0xf] %vm210_vm0, %v457_v9  ;;  %v462_v12 = vrot.slane %v455_v10, 4  ;;  %v885_v13 = vcombine.high %v237_v62, %v239_v8  ;;  %v884_v14 = vcombine.low %v237_v62, %v239_v8 }
  0xdb   : > { %v466_v15 = vsel %vm234_vm2, %v462_v12, %v463_v11  ;;  %688 = vmatprep.subr.bf16.mxu0 %v885_v13 }
  0xdc   : > { %v468_v16 = vsel %vm467_vm10, %v455_v10, %v466_v15  ;;  %v461_v17 = vpop.permute.xlu1 %460  ;;  %v459_v20 = vpop.permute.xlu0 %458  ;;  %v1002_v21 = vld [vmem:[#allocation2 + $0x20] ss:$12 sps:$4 sm:$0xff]   ;;  %689 = vmatpush1.bf16.msra.mxu0 %v884_v14 }
  0xdd   : > { %v465_v23 = vrot.slane %v461_v17, 4  ;;  %478 = vst.msk [vmem:[#allocation2 + $0xd4] sm:$0xf] %vm210_vm0, %v461_v17  ;;  %v464_v24 = vrot.slane %v459_v20, 4  ;;  %690 = vmatprep.subr.bf16.mxu0 %v882_v18  ;;  %730 = vmatpush1.bf16.msra.mxu1 %v1002_v21  ;;  %v879_v18 = vcombine.low %v1292_v22, %v1292_v22 }
  0xde   : > { %731 = vmatprep.subr.bf16.mxu1 %v1120_v2 }
  0xdf   : > { %v469_v26 = vsel %vm234_vm2, %v464_v24, %v465_v23 }
  0xe0   : > { %v470_v27 = vsel %vm467_vm10, %v459_v20, %v469_v26  ;;  %691 = vmatpush1.bf16.msra.mxu0 %v881_v19 }
  0xe1   : > { %v906_v28 = vcombine.high %v468_v16, %v470_v27  ;;  %v905_v29 = vcombine.low %v468_v16, %v470_v27  ;;  %732 = vmatpush1.bf16.msra.mxu1 %v1003_v25 }
  0xe2   : > { %747 = vmatprep.subr.bf16.mxu1 %v1120_v2 }
  0xe3   : > { %706 = vmatprep.subr.bf16.mxu0 %v906_v28 }
  0xe4   : > { %v1004_v30 = vld [vmem:[#allocation2 + $0xc8] ss:$12 sps:$4 sm:$0xff]   ;;  %707 = vmatpush2.bf16.msra.mxu0 %v905_v29 }
  0xe5   : > { %748 = vmatpush2.bf16.msra.mxu1 %v1004_v30 }
  0xe7   : > { %709 = vmatmul.mubr.bf16.vlgmr.msra.gmra.mxu0 %v879_v18 }
  0xe8   : > { %750 = vmatmul.mubr.bf16.vlgmr.msra.gmra.mxu1 %v879_v18 }
  0xe9   : > { %v520_v31 = vpop.permute.xlu0 %519 }
 0x1a7   : > { %v710_v32 = vpop.f32.mrf.mxu0 }
 0x1a8   : > { %v711_v0 = vadd.f32 %v710_v32, %v520_v31  ;;  %v751_v1 = vpop.f32.mrf.mxu1 }
 0x1a9   : > { %v712_v19 = vpop.f32.mrf.mxu0  ;;  %v752_v33 = vadd.f32 %v751_v1, %v520_v31 }
 0x1aa   : > { %v713_v34 = vadd.f32 %v712_v19, %v520_v31  ;;  %v753_v2 = vpop.f32.mrf.mxu1  ;;  %v757_v36 = vmax.f32 %v711_v0, 0.0 }
 0x1ab   : > { %v714_v35 = vpop.f32.mrf.mxu0  ;;  %v759_v22 = vmax.f32 %v752_v33, 0.0 }
 0x1ac   : > { %v758_v37 = vmax.f32 %v713_v34, 0.0  ;;  %v754_v38 = vpop.f32.mrf.mxu1 }
 0x1ad   : > { %v715_v39 = vpop.f32.mrf.mxu0  ;;  %v916_v40 = vpack.c.bf16 %v759_v22, %v759_v22 }
 0x1ae   : > { %v915_v41 = vpack.c.bf16 %v758_v37, %v757_v36  ;;  %v755_v42 = vpop.f32.mrf.mxu1 }
 0x1af   : > { %774 = vst.msk [vmem:[%s202_s30 + $0x8] sm:$0xf] %vm210_vm0, %v916_v40 }
 0x1b0   : > { %773 = vst [vmem:[%s202_s30] sm:$0xff] %v915_v41 }
 0x1b1   : > { %1048 = shalt.err (!%p1045_p6)
}
 0x1b2   : > { %s1049_s11 = scalar_lea.hbm %s1369_s6, 192  ;;  %s1053_s19 = scalar_lea.hbm %s1421_s3, 384 }
 0x1b3   : > { %p1050_p4 = scmp.ne.s32.totalorder %s1369_s6, %s1049_s11  ;;  %p1054_p13 = scmp.lt.s32.totalorder %s1369_s6, %s1421_s3 }
 0x1b4   : > { %p1055_p2 = scmp.lt.s32.totalorder %s1053_s19, %s1049_s11 }
 0x1b5   : > { %p1051_p7 = pnand %p1050_p4, %p1201_p9 }
 0x1b6   : > { %p1056_p8 = por %p1055_p2, %p1054_p13 }
 0x1b7   : > { %p1052_p10 = pneg %p1051_p7 }
 0x1b9   : > { %p1057_p12 = pnand %p1056_p8, %p1052_p10 }
 0x1bb   : > { %1060 = shalt.err (!%p1057_p12)
}
 0x1bc   : > { %924 = dma.vmem_to_hbm [thread:$0]  (%p1201_p9), %s1371_s5, 192, %s1369_s6, %s776_s15  }
 0x1bd PF: > { %s804_s23 = sand.u32 1, %s1095_s12   ;;  %p1427_p0 = scmp.ge.s32.totalorder %s1115_s17, 2 }
 0x1be   : > { %s805_s29 = scalar_lea.sflag [#allocation5], %s804_s23 }
 0x1bf   : > { %p931_p1 = pnand %p1427_p0, %p1208_p11 }
 0x1c1   : > { %p932_p3 = pneg %p931_p1 }
 0x1c3   : > { %1090 = dma.done.wait (%p932_p3), %s805_s29, 192  }
 0x1c4   : > { %1092 = vsyncadd (%p932_p3), %s805_s29, 4294967104  ;;  %s19_s17 = sadd.s32 1, %s1115_s17   ;;  %s1428_s12 = smov %s1099_s13 }
 0x1c5   : > { %p16_p5 = scmp.ge.s32.totalorder %s19_s17, 4   ;;  %s1429_s13 = smov %s1103_s14 }
 0x1c6   : > { %s1430_s14 = smov %s1206_s26  ;;  %s1431_s15 = smov %s1111_s16 }
 0x1c7   : > { %s1432_s16 = smov %s1434_s20  ;;  %18 = sbr.rel (!%p16_p5) target bundleno = 6 (0x6), region = 77 }
 0x1cc   :  { %810 = vsyncpa [#allocation4], 1 }
 0x1cd   :  { %812 = vsyncpa [#allocation4 + $0x1], 1 }
 0x1ce   :  { %813 = vsyncpa [#allocation5], 1 }
 0x1cf   :  { %815 = vsyncpa [#allocation5 + $0x1], 1 }

</bundles_post_ra>
